<compile_context>
chip_gen: v5e
topology: v5e:2x2
jax: 0.10.0
libtpu: 0.0.40
codegen_flags: <defaults>
</compile_context>

<pallas_src>
import functools

import jax
import jax.numpy as jnp
from jax import lax
from jax.experimental import pallas as pl
from jax.experimental.pallas import tpu as pltpu


def _round_up(x: int, m: int) -> int:
    return ((x + m - 1) // m) * m


def linreg_kernel(bias_sref, x_ref, w_ref, o_ref):
    """bias_sref: SMEM (1,) f32 (scalar-prefetched, no VMEM tile / DMA)
       x_ref:     VMEM (TB, F) f32 batch tile
       w_ref:     VMEM (1, F)  f32 weight row, resident across the whole grid
       o_ref:     VMEM (1, TB) f32 lane-dense output row (y transposed)
    """
    # (1,F) . (TB,F)^T -> (1,TB): contraction over F with a lane-dense result so the
    # store / HBM writeback uses full 128-lane vst instead of masked vst.msk that a
    # (TB,1) column output would force.
    y = lax.dot_general(
        w_ref[...], x_ref[...],
        dimension_numbers=(((1,), (1,)), ((), ())),
        preferred_element_type=jnp.float32,
    )
    o_ref[...] = y + bias_sref[0]


@functools.partial(jax.jit, static_argnames=("block_rows",))
def linear_regression_forward(x, weight, bias, *, block_rows: int = 512):
    """x: (B, F) f32, weight: (1, F) f32 (PyTorch nn.Linear layout), bias: (1,) f32."""
    B, F = x.shape

    # v7x-aware tile sizing: keep one x tile <= ~8 MiB (double-buffered => <= 16 MiB);
    # block_rows is a multiple of 128 whenever the batch is actually tiled.
    max_rows = max(128, ((8 << 20) // (F * 4)) // 128 * 128)
    block_rows = min(_round_up(block_rows, 128), max_rows)

    if B <= block_rows:
        tb = _round_up(B, 8)          # single tile: sublane-aligned, equals full dim
    else:
        tb = block_rows               # multi-tile: multiple of 128

    b_pad = _round_up(B, tb)
    num_tiles = b_pad // tb
    if b_pad != B:
        x = jnp.pad(x, ((0, b_pad - B), (0, 0)))  # padded rows sliced off below

    # Explicit VMEM budget: 2x double-buffered x tile + padded weight tile +
    # double-buffered output row + slack. Stays well under v7x's 64 MiB physical VMEM.
    vmem_limit = int(min(
        max(2 * tb * F * 4 + 2 * _round_up(F, 128) * 8 * 4 + 2 * tb * 4 + (2 << 20),
            8 << 20),
        48 << 20))

    grid_spec = pltpu.PrefetchScalarGridSpec(
        num_scalar_prefetch=1,                                # bias -> SMEM scalar
        grid=(num_tiles,),                                    # 1-D grid over batch
        in_specs=[
            pl.BlockSpec((tb, F), lambda i, b: (i, 0)),       # streamed x tile
            pl.BlockSpec((1, F), lambda i, b: (0, 0)),        # weight stays resident
        ],
        out_specs=pl.BlockSpec((1, tb), lambda i, b: (0, i)),  # lane-dense y^T tile
    )

    y_t = pl.pallas_call(
        linreg_kernel,
        out_shape=jax.ShapeDtypeStruct((1, b_pad), jnp.float32),
        grid_spec=grid_spec,
        compiler_params=pltpu.CompilerParams(
            dimension_semantics=("parallel",),   # shard batch tiles across TCs (v7x)
            vmem_limit_bytes=vmem_limit,
        ),
    )(bias, x, weight)

    # (1, b_pad) -> (B, 1), dropping padded rows.
    return y_t[0, :B][:, None]


if __name__ == "__main__":
    # Small shapes consistent with nn.Linear(n_features, 1)
    batch, n_features = 8, 32

    key = jax.random.PRNGKey(0)
    kx, kw, kb = jax.random.split(key, 3)

    x = jax.random.normal(kx, (batch, n_features), dtype=jnp.float32)

    # Deterministic parameter init mimicking PyTorch's nn.Linear default:
    # U(-1/sqrt(fan_in), 1/sqrt(fan_in))
    bound = 1.0 / jnp.sqrt(jnp.float32(n_features))
    weight = jax.random.uniform(kw, (1, n_features), jnp.float32, -bound, bound)
    bias = jax.random.uniform(kb, (1,), jnp.float32, -bound, bound)

    out = linear_regression_forward(x, weight, bias)
    out = jax.block_until_ready(out)

    ref = x @ weight.T + bias
    assert out.shape == (batch, 1)
    assert jnp.allclose(out, ref, atol=1e-5), "mismatch vs reference (small batch)"

    # Exercise the gridded multi-tile path (non-multiple batch -> padding + 4 tiles).
    big_batch = 1000
    xb = jax.random.normal(kx, (big_batch, n_features), dtype=jnp.float32)
    out_b = jax.block_until_ready(
        linear_regression_forward(xb, weight, bias, block_rows=256))
    ref_b = xb @ weight.T + bias
    assert out_b.shape == (big_batch, 1)
    assert jnp.allclose(out_b, ref_b, atol=1e-5), "mismatch vs reference (tiled batch)"

    print("KERNEL_OK")
</pallas_src>

<mosaic_0001>
module attributes {stable_mosaic.version = 11 : i64} {
  func.func @linreg_kernel(%arg0: i32, %arg1: memref<1xf32, #tpu.memory_space<smem>>, %arg2: memref<8x32xf32, #tpu.memory_space<vmem>>, %arg3: memref<1x32xf32, #tpu.memory_space<vmem>>, %arg4: memref<1x8xf32, #tpu.memory_space<vmem>>) attributes {dimension_semantics = [#tpu.dimension_semantics<parallel>], iteration_bounds = array<i64: 1>, scalar_prefetch = 1 : i64, scratch_operands = 0 : i64, tpu.core_type = #tpu.core_type<tc>, window_params = [{transform_indices = @transform_0, window_bounds = array<i64: 8, 32>}, {pipeline_mode = #tpu.pipeline_mode<synchronous>, transform_indices = @transform_1, window_bounds = array<i64: 1, 32>}, {transform_indices = @transform_2, window_bounds = array<i64: 1, 8>}]} {
    %c0 = arith.constant 0 : index
    %c0_0 = arith.constant 0 : index
    %0 = vector.load %arg3[%c0, %c0_0] : memref<1x32xf32, #tpu.memory_space<vmem>>, vector<1x32xf32>
    %c0_1 = arith.constant 0 : index
    %c0_2 = arith.constant 0 : index
    %1 = vector.load %arg2[%c0_1, %c0_2] : memref<8x32xf32, #tpu.memory_space<vmem>>, vector<8x32xf32>
    %cst = arith.constant dense<0.000000e+00> : vector<1x8xf32>
    %2 = tpu.matmul %0, %1, %cst {dimension_numbers = #tpu.dot_dimension_numbers<[1], [1], [0], [0], [0, 0, 1, 0], [], []>} : vector<1x32xf32>, vector<8x32xf32>, vector<1x8xf32> -> vector<1x8xf32>
    %c0_3 = arith.constant 0 : index
    %3 = memref.load %arg1[%c0_3] : memref<1xf32, #tpu.memory_space<smem>>
    %4 = vector.broadcast %3 : f32 to vector<1x8xf32>
    %5 = arith.addf %2, %4 : vector<1x8xf32>
    %c0_4 = arith.constant 0 : index
    %c0_5 = arith.constant 0 : index
    %6 = vector.load %arg4[%c0_4, %c0_5] : memref<1x8xf32, #tpu.memory_space<vmem>>, vector<1x8xf32>
    tpu.vector_store %arg4[%c0_4, %c0_5], %5 {strides = array<i32>} : memref<1x8xf32, #tpu.memory_space<vmem>>, vector<1x8xf32>,
    return
  }
  func.func @transform_0(%arg0: i32, %arg1: memref<1xf32, #tpu.memory_space<smem>>) -> (i32, i32) {
    %c0_i32 = arith.constant 0 : i32
    %c0_i32_0 = arith.constant 0 : i32
    return %arg0, %c0_i32 : i32, i32
  }
  func.func @transform_1(%arg0: i32, %arg1: memref<1xf32, #tpu.memory_space<smem>>) -> (i32, i32) {
    %c0_i32 = arith.constant 0 : i32
    %c0_i32_0 = arith.constant 0 : i32
    %c0_i32_1 = arith.constant 0 : i32
    return %c0_i32, %c0_i32_0 : i32, i32
  }
  func.func @transform_2(%arg0: i32, %arg1: memref<1xf32, #tpu.memory_space<smem>>) -> (i32, i32) {
    %c0_i32 = arith.constant 0 : i32
    %c0_i32_0 = arith.constant 0 : i32
    return %c0_i32, %arg0 : i32, i32
  }
}

</mosaic_0001>

<bundles_post_ra>
// kernel: linear_regression_forward.1
= control target key start
LH: loop header
LB: loop body
LE: loop exit
PB: predicated region body
PF: predicated region fallthrough
CT: control target
= control target key end

     0   :  { %9 = vsyncpa [#allocation5], 0  ;;  %s168_s0 = inlined_call_operand.<no memory space> [shape: f32[1], index: 0, kind: input, shape index: {}]   ;;  %s169_s1 = inlined_call_operand.hbm [shape: f32[8,32], index: 1, kind: input, shape index: {}]   ;;  %s170_s2 = inlined_call_operand.vmem [shape: f32[1,32], index: 2, kind: input, shape index: {}]   ;;  %s171_s3 = inlined_call_operand.hbm [shape: f32[1,8], index: 3, kind: output, shape index: {}]  }
   0x1   :  { %10 = vsyncpa [#allocation6], 0  ;;  %s16_s14 = sshll.u32 %s169_s1, 4  ;;  %s134_s15 = smov [#allocation4]   ;;  %s17_s14 = int_to_ptr.hbm [resolvable:$true] %s16_s14 }
   0x2   :  { %s18_s16 = sshll.u32 %s134_s15, 4  ;;  %s19_s16 = int_to_ptr.vmem [resolvable:$true] %s18_s16 }
   0x3   :  { %21 = dma.hbm_to_vmem [thread:$0]  %s17_s14, 128, %s19_s16, [#allocation5]  }
   0x4   :  { %130 = dma.done.wait [#allocation5], 128  }
   0x5   :  { %131 = vsyncadd [#allocation5], 4294967168  ;;  %vm32_vm0 = vcmask 261120   ;;  %v29_v0 = vld [vmem:[#allocation4] sm:$0xff]  ;;  %v31_v2 = vstv %s168_s0  ;;  %s135_s1 = smov [#allocation7]   ;;  %s68_s24 = sshll.u32 %s171_s3, 4  ;;  %s69_s24 = int_to_ptr.hbm [resolvable:$true] %s68_s24 }
   0x6   :  { %78 = vmatpush.xpose.msk.msra.mxu0 %vm32_vm0, %v29_v0  ;;  %v28_v1 = vld [vmem:[%s170_s2] sm:$0x1]  ;;  %s66_s21 = sshll.u32 %s135_s1, 4  ;;  %vm59_vm1 = vcmask 57344   ;;  %s67_s21 = int_to_ptr.vmem [resolvable:$true] %s66_s21 }
   0x9   :  { %79 = vmatmul.msk.f32.vlgmr.msra.gmra.mxu0 %vm32_vm0, %v28_v1 }
  0x86   :  { %v56_v3 = vpop.f32.mrf.mxu0 }
  0x87   :  { %v57_v4 = vadd.f32 %v56_v3, %v31_v2 }
  0x89   :  { %60 = vst.msk [vmem:[#allocation7] sm:$0x1] %vm59_vm1, %v57_v4 }
  0x8a   :  { %71 = dma.vmem_to_hbm [thread:$0]  %s67_s21, 16, %s69_s24, [#allocation6]  }
  0x8b   :  { %132 = dma.done.wait [#allocation6], 16  }
  0x8c   :  { %133 = vsyncadd [#allocation6], 4294967280 }
  0x8d   :  { %76 = vsyncpa [#allocation5], 1 }
  0x8e   :  { %77 = vsyncpa [#allocation6], 1 }

</bundles_post_ra>
